<compile_context>
chip_gen: v7x
topology: tpu7x:2x2x1
jax: 0.10.0
libtpu: 0.0.40
codegen_flags: <defaults>
</compile_context>

<pallas_src>
import jax
import jax.numpy as jnp
from jax.experimental import pallas as pl
from jax.experimental.pallas import tpu as pltpu


def _round_up(n, m):
    return ((n + m - 1) // m) * m


def mlp_kernel(x_ref, w1_ref, b1_ref, w2_ref, b2_ref, w3t_ref, b3_ref, o_ref):
    # x tile: (TM, D_in) bf16; w1/w2 bf16; biases + w3 (as a (1,8) row) in f32.
    # fc1 + ReLU  (MXU, f32 accumulate; elementwise in f32)
    h1 = jnp.dot(x_ref[...], w1_ref[...], preferred_element_type=jnp.float32)
    h1 = jnp.maximum(h1 + b1_ref[...], 0.0)
    # fc2 + ReLU  (MXU bf16 path, f32 accumulate)
    h2 = jnp.dot(h1.astype(jnp.bfloat16), w2_ref[...],
                 preferred_element_type=jnp.float32)
    h2 = jnp.maximum(h2 + b2_ref[...], 0.0)
    # fc3 (8 -> 1) + ReLU on the VPU/XLU: broadcast-multiply + lane reduce.
    h3 = jnp.sum(h2 * w3t_ref[...], axis=-1, keepdims=True) + b3_ref[...]
    o_ref[...] = jnp.maximum(h3, 0.0).astype(o_ref.dtype)


def mlp_forward(x, params, *, tm=1024):
    """x: (B, input_dim) f32. params: w{1,2,3}, b{1,2,3} (biases shaped (1, N))."""
    B, D = x.shape

    # Tile size: clamp to (padded) batch for small problems, pad batch to a
    # multiple of the tile so every grid step sees a full block.
    tm = min(tm, _round_up(B, 8))
    padded_b = _round_up(B, tm)
    x_p = x if padded_b == B else jnp.pad(x, ((0, padded_b - B), (0, 0)))

    # bf16 input/weight streams for bandwidth; biases & w3 stay f32 (VPU path).
    x_bf = x_p.astype(jnp.bfloat16)
    w1 = params["w1"].astype(jnp.bfloat16)          # (D, 16)
    w2 = params["w2"].astype(jnp.bfloat16)          # (16, 8)
    w3t = params["w3"].T.astype(jnp.float32)        # (1, 8) row for VPU reduce
    b1, b2, b3 = params["b1"], params["b2"], params["b3"]

    grid = (pl.cdiv(padded_b, tm),)

    h1_n, h2_n = w1.shape[1], w2.shape[1]
    flops = 2 * padded_b * (D * h1_n + h1_n * h2_n + h2_n * 1)
    weight_bytes = (D * h1_n + h1_n * h2_n) * 2 + h2_n * 4 \
        + (h1_n + h2_n + 1) * 4
    bytes_accessed = padded_b * (D * 2 + 4) + weight_bytes

    resident = lambda i: (0, 0)  # weights/biases: same block every grid step

    out = pl.pallas_call(
        mlp_kernel,
        out_shape=jax.ShapeDtypeStruct((padded_b, 1), jnp.float32),
        grid=grid,
        in_specs=[
            pl.BlockSpec((tm, D), lambda i: (i, 0)),   # x tile streams over B
            pl.BlockSpec((D, h1_n), resident),         # w1
            pl.BlockSpec((1, h1_n), resident),         # b1
            pl.BlockSpec((h1_n, h2_n), resident),      # w2
            pl.BlockSpec((1, h2_n), resident),         # b2
            pl.BlockSpec((1, h2_n), resident),         # w3^T
            pl.BlockSpec((1, 1), resident),            # b3
        ],
        out_specs=pl.BlockSpec((tm, 1), lambda i: (i, 0)),
        compiler_params=pltpu.CompilerParams(
            dimension_semantics=("parallel",),
            vmem_limit_bytes=32 * 1024 * 1024,
        ),
        cost_estimate=pl.CostEstimate(
            flops=flops, transcendentals=0, bytes_accessed=bytes_accessed),
    )(x_bf, w1, b1, w2, b2, w3t, b3)

    return out[:B]


def init_params(input_dim, key):
    """Deterministic init mimicking nn.Linear's uniform(-1/sqrt(fan_in), ...)."""
    dims = [(input_dim, 16), (16, 8), (8, 1)]
    params = {}
    for i, (fan_in, fan_out) in enumerate(dims, start=1):
        key, kw, kb = jax.random.split(key, 3)
        bound = 1.0 / jnp.sqrt(float(fan_in))
        params[f"w{i}"] = jax.random.uniform(
            kw, (fan_in, fan_out), jnp.float32, minval=-bound, maxval=bound)
        params[f"b{i}"] = jax.random.uniform(
            kb, (1, fan_out), jnp.float32, minval=-bound, maxval=bound)
    return params


def reference_forward(x, params):
    """Pure-JAX reference mirroring the kernel's bf16-input / f32-accumulate recipe."""
    f32 = jnp.float32
    xb = x.astype(jnp.bfloat16).astype(f32)
    w1 = params["w1"].astype(jnp.bfloat16).astype(f32)
    w2 = params["w2"].astype(jnp.bfloat16).astype(f32)
    h1 = jnp.maximum(xb @ w1 + params["b1"], 0.0)
    h1 = h1.astype(jnp.bfloat16).astype(f32)
    h2 = jnp.maximum(h1 @ w2 + params["b2"], 0.0)
    h3 = jnp.maximum(h2 @ params["w3"] + params["b3"], 0.0)
    return h3


if __name__ == "__main__":
    key = jax.random.PRNGKey(0)
    key, kx = jax.random.split(key)

    batch, input_dim = 8, 32
    x = jax.random.normal(kx, (batch, input_dim), jnp.float32)
    params = init_params(input_dim, key)

    out = mlp_forward(x, params)
    out = jax.block_until_ready(out)

    ref = reference_forward(x, params)
    assert out.shape == (batch, 1), out.shape
    assert jnp.allclose(out, ref, atol=1e-3, rtol=1e-3), (
        "mismatch vs reference: max abs diff = "
        f"{float(jnp.max(jnp.abs(out - ref)))}")

    print("KERNEL_OK")
</pallas_src>

<mosaic_0001>
module attributes {stable_mosaic.version = 11 : i64} {
  func.func @mlp_kernel(%arg0: i32, %arg1: memref<8x32xbf16, #tpu.memory_space<vmem>>, %arg2: memref<32x16xbf16, #tpu.memory_space<vmem>>, %arg3: memref<1x16xf32, #tpu.memory_space<vmem>>, %arg4: memref<16x8xbf16, #tpu.memory_space<vmem>>, %arg5: memref<1x8xf32, #tpu.memory_space<vmem>>, %arg6: memref<1x8xf32, #tpu.memory_space<vmem>>, %arg7: memref<1x1xf32, #tpu.memory_space<vmem>>, %arg8: memref<8x1xf32, #tpu.memory_space<vmem>>) attributes {dimension_semantics = [#tpu.dimension_semantics<parallel>], iteration_bounds = array<i64: 1>, scalar_prefetch = 0 : i64, scratch_operands = 0 : i64, tpu.core_type = #tpu.core_type<tc>, window_params = [{transform_indices = @transform_0, window_bounds = array<i64: 8, 32>}, {pipeline_mode = #tpu.pipeline_mode<synchronous>, transform_indices = @transform_1, window_bounds = array<i64: 32, 16>}, {pipeline_mode = #tpu.pipeline_mode<synchronous>, transform_indices = @transform_2, window_bounds = array<i64: 1, 16>}, {pipeline_mode = #tpu.pipeline_mode<synchronous>, transform_indices = @transform_3, window_bounds = array<i64: 16, 8>}, {pipeline_mode = #tpu.pipeline_mode<synchronous>, transform_indices = @transform_4, window_bounds = array<i64: 1, 8>}, {pipeline_mode = #tpu.pipeline_mode<synchronous>, transform_indices = @transform_5, window_bounds = array<i64: 1, 8>}, {pipeline_mode = #tpu.pipeline_mode<synchronous>, transform_indices = @transform_6, window_bounds = array<i64: 1, 1>}, {transform_indices = @transform_7, window_bounds = array<i64: 8, 1>}]} {
    %c0 = arith.constant 0 : index
    %c0_0 = arith.constant 0 : index
    %0 = vector.load %arg1[%c0, %c0_0] : memref<8x32xbf16, #tpu.memory_space<vmem>>, vector<8x32xbf16>
    %c0_1 = arith.constant 0 : index
    %c0_2 = arith.constant 0 : index
    %1 = vector.load %arg2[%c0_1, %c0_2] : memref<32x16xbf16, #tpu.memory_space<vmem>>, vector<32x16xbf16>
    %cst = arith.constant dense<0.000000e+00> : vector<8x16xf32>
    %2 = tpu.matmul %0, %1, %cst {dimension_numbers = #tpu.dot_dimension_numbers<[1], [0], [0], [1], [0, 0, 1, 1], [], []>} : vector<8x32xbf16>, vector<32x16xbf16>, vector<8x16xf32> -> vector<8x16xf32>
    %c0_3 = arith.constant 0 : index
    %c0_4 = arith.constant 0 : index
    %3 = vector.load %arg3[%c0_3, %c0_4] : memref<1x16xf32, #tpu.memory_space<vmem>>, vector<1x16xf32>
    %4 = vector.broadcast %3 : vector<1x16xf32> to vector<8x16xf32>
    %5 = arith.addf %2, %4 : vector<8x16xf32>
    %cst_5 = arith.constant 0.000000e+00 : f32
    %6 = vector.broadcast %cst_5 : f32 to vector<8x16xf32>
    %7 = arith.maximumf %5, %6 : vector<8x16xf32>
    %8 = arith.truncf %7 : vector<8x16xf32> to vector<8x16xbf16>
    %c0_6 = arith.constant 0 : index
    %c0_7 = arith.constant 0 : index
    %9 = vector.load %arg4[%c0_6, %c0_7] : memref<16x8xbf16, #tpu.memory_space<vmem>>, vector<16x8xbf16>
    %cst_8 = arith.constant dense<0.000000e+00> : vector<8x8xf32>
    %10 = tpu.matmul %8, %9, %cst_8 {dimension_numbers = #tpu.dot_dimension_numbers<[1], [0], [0], [1], [0, 0, 1, 1], [], []>} : vector<8x16xbf16>, vector<16x8xbf16>, vector<8x8xf32> -> vector<8x8xf32>
    %c0_9 = arith.constant 0 : index
    %c0_10 = arith.constant 0 : index
    %11 = vector.load %arg5[%c0_9, %c0_10] : memref<1x8xf32, #tpu.memory_space<vmem>>, vector<1x8xf32>
    %12 = vector.broadcast %11 : vector<1x8xf32> to vector<8x8xf32>
    %13 = arith.addf %10, %12 : vector<8x8xf32>
    %cst_11 = arith.constant 0.000000e+00 : f32
    %14 = vector.broadcast %cst_11 : f32 to vector<8x8xf32>
    %15 = arith.maximumf %13, %14 : vector<8x8xf32>
    %c0_12 = arith.constant 0 : index
    %c0_13 = arith.constant 0 : index
    %16 = vector.load %arg6[%c0_12, %c0_13] : memref<1x8xf32, #tpu.memory_space<vmem>>, vector<1x8xf32>
    %17 = vector.broadcast %16 : vector<1x8xf32> to vector<8x8xf32>
    %18 = arith.mulf %15, %17 : vector<8x8xf32>
    %cst_14 = arith.constant dense<0.000000e+00> : vector<8xf32>
    %19 = vector.multi_reduction <add>, %18, %cst_14 [1] : vector<8x8xf32> to vector<8xf32>
    %20 = vector.shape_cast %19 : vector<8xf32> to vector<8x1xf32>
    %c0_15 = arith.constant 0 : index
    %c0_16 = arith.constant 0 : index
    %21 = vector.load %arg7[%c0_15, %c0_16] : memref<1x1xf32, #tpu.memory_space<vmem>>, vector<1x1xf32>
    %22 = vector.broadcast %21 : vector<1x1xf32> to vector<8x1xf32>
    %23 = arith.addf %20, %22 : vector<8x1xf32>
    %cst_17 = arith.constant 0.000000e+00 : f32
    %24 = vector.broadcast %cst_17 : f32 to vector<8x1xf32>
    %25 = arith.maximumf %23, %24 : vector<8x1xf32>
    %c0_18 = arith.constant 0 : index
    %c0_19 = arith.constant 0 : index
    %26 = vector.load %arg8[%c0_18, %c0_19] : memref<8x1xf32, #tpu.memory_space<vmem>>, vector<8x1xf32>
    tpu.vector_store %arg8[%c0_18, %c0_19], %25 {strides = array<i32>} : memref<8x1xf32, #tpu.memory_space<vmem>>, vector<8x1xf32>,
    return
  }
  func.func @transform_0(%arg0: i32) -> (i32, i32) {
    %c0_i32 = arith.constant 0 : i32
    %c0_i32_0 = arith.constant 0 : i32
    return %arg0, %c0_i32 : i32, i32
  }
  func.func @transform_1(%arg0: i32) -> (i32, i32) {
    %c0_i32 = arith.constant 0 : i32
    %c0_i32_0 = arith.constant 0 : i32
    %c0_i32_1 = arith.constant 0 : i32
    return %c0_i32, %c0_i32_0 : i32, i32
  }
  func.func @transform_2(%arg0: i32) -> (i32, i32) {
    %c0_i32 = arith.constant 0 : i32
    %c0_i32_0 = arith.constant 0 : i32
    %c0_i32_1 = arith.constant 0 : i32
    return %c0_i32, %c0_i32_0 : i32, i32
  }
  func.func @transform_3(%arg0: i32) -> (i32, i32) {
    %c0_i32 = arith.constant 0 : i32
    %c0_i32_0 = arith.constant 0 : i32
    %c0_i32_1 = arith.constant 0 : i32
    return %c0_i32, %c0_i32_0 : i32, i32
  }
  func.func @transform_4(%arg0: i32) -> (i32, i32) {
    %c0_i32 = arith.constant 0 : i32
    %c0_i32_0 = arith.constant 0 : i32
    %c0_i32_1 = arith.constant 0 : i32
    return %c0_i32, %c0_i32_0 : i32, i32
  }
  func.func @transform_5(%arg0: i32) -> (i32, i32) {
    %c0_i32 = arith.constant 0 : i32
    %c0_i32_0 = arith.constant 0 : i32
    %c0_i32_1 = arith.constant 0 : i32
    return %c0_i32, %c0_i32_0 : i32, i32
  }
  func.func @transform_6(%arg0: i32) -> (i32, i32) {
    %c0_i32 = arith.constant 0 : i32
    %c0_i32_0 = arith.constant 0 : i32
    %c0_i32_1 = arith.constant 0 : i32
    return %c0_i32, %c0_i32_0 : i32, i32
  }
  func.func @transform_7(%arg0: i32) -> (i32, i32) {
    %c0_i32 = arith.constant 0 : i32
    %c0_i32_0 = arith.constant 0 : i32
    return %arg0, %c0_i32 : i32, i32
  }
}

</mosaic_0001>

<bundles_post_ra>
// kernel: tpu_custom_call.1
= control target key start
LH: loop header
LB: loop body
LE: loop exit
PB: predicated region body
PF: predicated region fallthrough
CT: control target
= control target key end

     0   :  { %v219_v0 = vmov 0.0   ;;  %vm220_vm0 = vmmov 0   ;;  %vm53_vm1 = vcmask 261120   ;;  %vm114_vm2 = vcmask 130048   ;;  %s288_s1 = inlined_call_operand.vmem [shape: bf16[32,16], index: 1, kind: input, shape index: {}]   ;;  %s289_s0 = inlined_call_operand.vmem [shape: bf16[8,32], index: 0, kind: input, shape index: {}]   ;;  %s290_s3 = inlined_call_operand.vmem [shape: bf16[16,8], index: 3, kind: input, shape index: {}]   ;;  %s291_s2 = inlined_call_operand.vmem [shape: f32[1,16], index: 2, kind: input, shape index: {}]   ;;  %s292_s6 = inlined_call_operand.<no memory space> [shape: f32[1,1], index: 6, kind: input, shape index: {}]   ;;  %s293_s4 = inlined_call_operand.vmem [shape: f32[1,8], index: 4, kind: input, shape index: {}]   ;;  %s294_s5 = inlined_call_operand.vmem [shape: f32[1,8], index: 5, kind: input, shape index: {}]   ;;  %s295_s7 = inlined_call_operand.vmem [shape: f32[8,1], index: 7, kind: output, shape index: {}]  }
   0x1   :  { %200 = vmatprep.subr.bf16.mxu0 %v219_v0  ;;  %v216_v1 = vld [vmem:[%s288_s1] sm:$0xff]   ;;  %204 = vmatprep.mubr.msk.bf16.mxu0 %vm220_vm0, %v219_v0  ;;  %v217_v2 = vld [vmem:[%s288_s1 + $0x8] sm:$0xff]   ;;  %v12_v13 = vstv %s292_s6  ;;  %vm167_vm3 = vcmask 64512   ;;  %vm180_vm4 = vcmask 7168  }
   0x2   :  { %208 = vmatprep.subr.bf16.mxu1 %v219_v0  ;;  %210 = vmatprep.mubr.msk.bf16.mxu1 %vm220_vm0, %v219_v0  ;;  %v29_v3 = vld [vmem:[%s289_s0] sm:$0xf]  ;;  %13 = vst [vmem:[#allocation2] sm:$0x1] %v12_v13 }
   0x3   :  { %201 = vmatpush3.bf16.msra.mxu0 %v216_v1  ;;  %v218_v4 = vld [vmem:[%s290_s3] sm:$0xff]  }
   0x4   :  { %202 = vmatprep.subr.bf16.mxu0 %v219_v0  ;;  %209 = vmatpush3.bf16.msra.mxu1 %v218_v4  ;;  %v186_v5 = vld [vmem:[%s291_s2] ss:$0 sm:$0xff] }
   0x5   :  { %v190_v14 = vld [vmem:[%s293_s4] ss:$0 sm:$0xff] }
   0x6   :  { %v193_v19 = vld [vmem:[%s294_s5] ss:$0 sm:$0xff] }
   0x7   :  { %203 = vmatpush3.bf16.msra.mxu0 %v217_v2 }
   0x9   :  { %v194_v24 = vld [vmem:[#allocation2] ss:$0 sm:$0xff] }
   0xa   :  { %205 = vmatmul.mubr.msk.bf16.vlgmr.msra.gmra.mrb[0].mxu0 %vm53_vm1, %v29_v3 }
  0xdd   :  { %v91_v6 = vpop.f32.mrb[0].mxu0 }
  0xde   :  { %v92_v7 = vadd.f32 %v186_v5, %v91_v6  ;;  %v206_v8 = vpop.f32.mrb[1].mxu0 }
  0xdf   :  { %v94_v9 = vpop.f32.mrb[2].mxu0 }
  0xe0   :  { %v97_v10 = vmax.f32 %v92_v7, 0.0  ;;  %v207_v11 = vpop.f32.mrb[3].mxu0 }
  0xe2   :  { %v98_v12 = vpack.c.bf16 %v97_v10, %v97_v10 }
  0xe4   :  { %211 = vmatmul.mubr.msk.bf16.vlgmr.msra.gmra.mrb[0].mxu1 %vm114_vm2, %v98_v12 }
 0x1b7   :  { %v152_v15 = vpop.f32.mrb[0].mxu1 }
 0x1b8   :  { %v153_v16 = vadd.f32 %v190_v14, %v152_v15  ;;  %v212_v17 = vpop.f32.mrb[1].mxu1 }
 0x1b9   :  { %v155_v18 = vpop.f32.mrb[2].mxu1 }
 0x1ba   :  { %v158_v20 = vmax.f32 %v153_v16, 0.0  ;;  %v213_v21 = vpop.f32.mrb[3].mxu1 }
 0x1bc   :  { %v166_v22 = vmul.f32 %v193_v19, %v158_v20 }
 0x1be   :  { %v168_v23 = vsel %vm167_vm3, %v166_v22, 0.0 }
 0x1bf   :  { %169 = vadd.xlane.f32.xlu0 %v168_v23 }
 0x24c   :  { %v170_v25 = vpop.xlane.xlu0 %169 }
 0x24d   :  { %v178_v26 = vadd.f32 %v194_v24, %v170_v25 }
 0x24f   :  { %v179_v27 = vmax.f32 %v178_v26, 0.0 }
 0x251   :  { %181 = vst.msk [vmem:[%s295_s7] sm:$0xff] %vm180_vm4, %v179_v27 }

</bundles_post_ra>
